<compile_context>
chip_gen: v6e
topology: v6e:2x2x1
jax: 0.10.0
libtpu: 0.0.40
codegen_flags: <defaults>
</compile_context>

<pallas_src>
import numpy as np
import jax
import jax.numpy as jnp
from jax.experimental import pallas as pl
from jax.experimental.pallas import tpu as pltpu

N_QUBITS = 10
MAX_LAYERS = 21
Q_DEPTH = 20
Q_DELTA = 0.01
DIM = 2 ** N_QUBITS            # 1024 amplitudes
OUT_LANES = 128                # lane-dense output width (first N_QUBITS columns are real)
_IDX = np.arange(DIM)


# ----------------------------------------------------------------------------- Pallas kernel ---
def quantumnet_kernel(x_ref, ut_ref, bias_ref, sign_ref, out_ref):
    feat = x_ref.shape[1]
    dim = ut_ref.shape[1]

    # q_in = tanh(pre_out) * pi / 2                                   (VPU / EUP)
    q_in = jnp.tanh(x_ref[...]) * jnp.float32(np.pi / 2.0)

    # AmplitudeEmbedding(pad_with=0.5) norm, folded: ||[q_in | 0.5...]||^2 = sum(q_in^2) + 0.25*(DIM-feat)
    # TODO(synk): the H_layer before AmplitudeEmbedding is intentionally omitted — amplitude state
    # preparation overrides the state, so the Hadamards have no observable effect.
    norm2 = jnp.sum(q_in * q_in, axis=1, keepdims=True) + jnp.float32(0.25 * (dim - feat))
    norm2 = jnp.maximum(norm2, jnp.float32(1e-30))      # guard feat==DIM + zero-padded rows

    # Whole 20-layer circuit applied to the un-normalized state:
    #   y = q_in @ U^T[:feat, :] + 0.5 * sum_{s>=feat} U^T[s, :]      (bias precomputed on host)
    y = jnp.dot(q_in.astype(jnp.bfloat16), ut_ref[...],
                preferred_element_type=jnp.float32) + bias_ref[...]
    probs = y * y                                        # un-normalized |amplitude|^2

    # <Z_j> readout: probs @ S (S zero-padded to 128 lanes), normalized on the small output block.
    acc = jnp.dot(probs.astype(jnp.bfloat16), sign_ref[...],
                  preferred_element_type=jnp.float32)
    out_ref[...] = acc * (1.0 / norm2)


# -------------------------------------------------- circuit composition (host-side numpy glue) ---
def _apply_cnot(amp, cw, tw):
    """amp: (DIM, ...) amplitudes indexed by basis state (wire 0 = MSB)."""
    ctrl = (_IDX >> (N_QUBITS - 1 - cw)) & 1
    src = np.where(ctrl == 1, _IDX ^ (1 << (N_QUBITS - 1 - tw)), _IDX)
    return amp[src]


def _apply_ry(amp, theta, w):
    c, s = np.cos(theta / 2.0), np.sin(theta / 2.0)
    trailing = amp.shape[1:]
    a = amp.reshape(2 ** w, 2, -1)
    lo, hi = a[:, 0], a[:, 1]
    out = np.stack([c * lo - s * hi, s * lo + c * hi], axis=1)
    return out.reshape((DIM,) + trailing)


def _apply_circuit(amp, weights):
    for k in range(Q_DEPTH):
        for i in range(0, N_QUBITS - 1, 2):       # entangler, first CNOT pass
            amp = _apply_cnot(amp, i, i + 1)
        for i in range(1, N_QUBITS - 1, 2):       # entangler, second CNOT pass
            amp = _apply_cnot(amp, i, i + 1)
        for w in range(N_QUBITS):                 # RY layer
            amp = _apply_ry(amp, weights[k + 1, w], w)
    return amp


def _sign_matrix():
    bits = (_IDX[:, None] >> (N_QUBITS - 1 - np.arange(N_QUBITS)[None, :])) & 1
    return 1.0 - 2.0 * bits                        # (DIM, N_QUBITS)


def build_constants(q_params, feat):
    """Compose the 20-layer circuit once per q_params; only feat+1 basis columns are needed."""
    weights = np.asarray(q_params, dtype=np.float64).reshape(MAX_LAYERS, N_QUBITS)
    cols = np.zeros((DIM, feat + 1), dtype=np.float64)
    cols[np.arange(feat), np.arange(feat)] = 1.0      # basis vectors e_0 .. e_{feat-1}
    cols[feat:, feat] = 0.5                           # constant 0.5 padding vector
    cols = _apply_circuit(cols, weights)              # columns j<feat -> U[:, j]; column feat -> U @ pad
    ut_top = np.ascontiguousarray(cols[:, :feat].T)   # (feat, DIM) == U^T[:feat, :]
    bias = cols[:, feat].reshape(1, DIM)              # 0.5 * sum_{s>=feat} U^T[s, :]
    sign_pad = np.zeros((DIM, OUT_LANES), dtype=np.float64)
    sign_pad[:, :N_QUBITS] = _sign_matrix()           # lane-dense PauliZ readout
    return (jnp.asarray(ut_top, dtype=jnp.bfloat16),
            jnp.asarray(bias, dtype=jnp.float32),
            jnp.asarray(sign_pad, dtype=jnp.bfloat16))


# --------------------------------------------------------------------------------- wrapper ---
def _round_up(n, m):
    return ((n + m - 1) // m) * m


def quantumnet_forward(x, q_params=None, constants=None, block_batch=None):
    x = jnp.asarray(x, dtype=jnp.float32)
    batch, feat = x.shape
    assert feat <= DIM, "feature dim must fit in the 2^10 amplitude vector"
    if constants is None:
        assert q_params is not None, "pass q_params or precomputed constants"
        constants = build_constants(q_params, feat)
    ut_top, bias, sign = constants
    assert ut_top.shape == (feat, DIM)

    if block_batch is None:
        rows = _round_up(max(batch, 1), 8)
        if rows >= 16:
            # >= 2 grid tiles when the batch allows it (both v7x TCs get work), <= 512 rows/tile.
            block_batch = min(512, _round_up((rows + 1) // 2, 8))
        else:
            block_batch = rows
    padded = _round_up(batch, block_batch)
    if padded != batch:
        # Padded rows are harmless: all compute is per-row, norm^2 is clamped away from 0.
        x = jnp.pad(x, ((0, padded - batch), (0, 0)))
    n_tiles = padded // block_batch

    out = pl.pallas_call(
        quantumnet_kernel,
        out_shape=jax.ShapeDtypeStruct((padded, OUT_LANES), jnp.float32),
        grid=(n_tiles,),
        in_specs=[
            pl.BlockSpec((block_batch, feat), lambda i: (i, 0)),
            pl.BlockSpec((feat, DIM), lambda i: (0, 0)),          # U^T[:feat,:] resident (bf16)
            pl.BlockSpec((1, DIM), lambda i: (0, 0)),             # folded 0.5-pad bias (f32)
            pl.BlockSpec((DIM, OUT_LANES), lambda i: (0, 0)),     # PauliZ readout resident (bf16)
        ],
        out_specs=pl.BlockSpec((block_batch, OUT_LANES), lambda i: (i, 0)),
        compiler_params=pltpu.CompilerParams(dimension_semantics=("parallel",)),
    )(x, ut_top, bias, sign)
    return out[:batch, :N_QUBITS]


# ----------------------------------------------------------------- independent numpy reference ---
def reference_forward(x_np, weights_np):
    batch, feat = x_np.shape
    sign = _sign_matrix()
    out = np.zeros((batch, N_QUBITS), dtype=np.float64)
    for bi in range(batch):
        q_in = np.tanh(x_np[bi].astype(np.float64)) * np.pi / 2.0
        amps = np.concatenate([q_in, np.full((DIM - feat,), 0.5)])
        amps = amps / np.linalg.norm(amps)         # AmplitudeEmbedding (pad_with=0.5)
        amps = _apply_circuit(amps, weights_np)
        out[bi] = (amps ** 2) @ sign
    return out


# --------------------------------------------------------------------------------------- main ---
if __name__ == "__main__":
    key = jax.random.PRNGKey(0)
    kx, kp = jax.random.split(key)

    batch, feat = 2, 32
    x = jax.random.normal(kx, (batch, feat), dtype=jnp.float32)
    # nn.Parameter(q_delta * torch.randn(max_layers * n_qubits)), deterministic JAX init
    q_params = Q_DELTA * jax.random.normal(kp, (MAX_LAYERS * N_QUBITS,), dtype=jnp.float32)

    constants = build_constants(q_params, feat)    # composed once per q_params (cached by caller)
    out = jax.block_until_ready(quantumnet_forward(x, constants=constants))

    ref = reference_forward(np.asarray(x),
                            np.asarray(q_params, dtype=np.float64).reshape(MAX_LAYERS, N_QUBITS))
    diff = np.max(np.abs(np.asarray(out, dtype=np.float64) - ref))
    if not np.allclose(np.asarray(out, dtype=np.float64), ref, atol=1e-3, rtol=1e-3):
        raise AssertionError(f"Pallas kernel mismatch vs reference, max abs diff = {diff}")
    print("KERNEL_OK")
</pallas_src>

<mosaic_0001>
module attributes {stable_mosaic.version = 11 : i64} {
  func.func @quantumnet_kernel(%arg0: i32, %arg1: memref<8x32xf32, #tpu.memory_space<vmem>>, %arg2: memref<32x1024xbf16, #tpu.memory_space<vmem>>, %arg3: memref<1x1024xf32, #tpu.memory_space<vmem>>, %arg4: memref<1024x128xbf16, #tpu.memory_space<vmem>>, %arg5: memref<8x128xf32, #tpu.memory_space<vmem>>) attributes {dimension_semantics = [#tpu.dimension_semantics<parallel>], iteration_bounds = array<i64: 1>, scalar_prefetch = 0 : i64, scratch_operands = 0 : i64, tpu.core_type = #tpu.core_type<tc>, window_params = [{transform_indices = @transform_0, window_bounds = array<i64: 8, 32>}, {pipeline_mode = #tpu.pipeline_mode<synchronous>, transform_indices = @transform_1, window_bounds = array<i64: 32, 1024>}, {pipeline_mode = #tpu.pipeline_mode<synchronous>, transform_indices = @transform_2, window_bounds = array<i64: 1, 1024>}, {pipeline_mode = #tpu.pipeline_mode<synchronous>, transform_indices = @transform_3, window_bounds = array<i64: 1024, 128>}, {transform_indices = @transform_4, window_bounds = array<i64: 8, 128>}]} {
    %c0 = arith.constant 0 : index
    %c0_0 = arith.constant 0 : index
    %0 = vector.load %arg1[%c0, %c0_0] : memref<8x32xf32, #tpu.memory_space<vmem>>, vector<8x32xf32>
    %1 = math.tanh %0 : vector<8x32xf32>
    %cst = arith.constant 1.57079637 : f32
    %2 = vector.broadcast %cst : f32 to vector<8x32xf32>
    %3 = arith.mulf %1, %2 : vector<8x32xf32>
    %4 = arith.mulf %3, %3 : vector<8x32xf32>
    %cst_1 = arith.constant dense<0.000000e+00> : vector<8xf32>
    %5 = vector.multi_reduction <add>, %4, %cst_1 [1] : vector<8x32xf32> to vector<8xf32>
    %6 = vector.shape_cast %5 : vector<8xf32> to vector<8x1xf32>
    %cst_2 = arith.constant 2.480000e+02 : f32
    %7 = vector.broadcast %cst_2 : f32 to vector<8x1xf32>
    %8 = arith.addf %6, %7 : vector<8x1xf32>
    %cst_3 = arith.constant 1.000000e-30 : f32
    %9 = vector.broadcast %cst_3 : f32 to vector<8x1xf32>
    %10 = arith.maximumf %8, %9 : vector<8x1xf32>
    %11 = arith.truncf %3 : vector<8x32xf32> to vector<8x32xbf16>
    %c0_4 = arith.constant 0 : index
    %c0_5 = arith.constant 0 : index
    %12 = vector.load %arg2[%c0_4, %c0_5] : memref<32x1024xbf16, #tpu.memory_space<vmem>>, vector<32x1024xbf16>
    %cst_6 = arith.constant dense<0.000000e+00> : vector<8x1024xf32>
    %13 = tpu.matmul %11, %12, %cst_6 {dimension_numbers = #tpu.dot_dimension_numbers<[1], [0], [0], [1], [0, 0, 1, 1], [], []>} : vector<8x32xbf16>, vector<32x1024xbf16>, vector<8x1024xf32> -> vector<8x1024xf32>
    %c0_7 = arith.constant 0 : index
    %c0_8 = arith.constant 0 : index
    %14 = vector.load %arg3[%c0_7, %c0_8] : memref<1x1024xf32, #tpu.memory_space<vmem>>, vector<1x1024xf32>
    %15 = vector.broadcast %14 : vector<1x1024xf32> to vector<8x1024xf32>
    %16 = arith.addf %13, %15 : vector<8x1024xf32>
    %17 = arith.mulf %16, %16 : vector<8x1024xf32>
    %18 = arith.truncf %17 : vector<8x1024xf32> to vector<8x1024xbf16>
    %c0_9 = arith.constant 0 : index
    %c0_10 = arith.constant 0 : index
    %19 = vector.load %arg4[%c0_9, %c0_10] : memref<1024x128xbf16, #tpu.memory_space<vmem>>, vector<1024x128xbf16>
    %cst_11 = arith.constant dense<0.000000e+00> : vector<8x128xf32>
    %20 = tpu.matmul %18, %19, %cst_11 {dimension_numbers = #tpu.dot_dimension_numbers<[1], [0], [0], [1], [0, 0, 1, 1], [], []>} : vector<8x1024xbf16>, vector<1024x128xbf16>, vector<8x128xf32> -> vector<8x128xf32>
    %cst_12 = arith.constant 1.000000e+00 : f32
    %21 = vector.broadcast %cst_12 : f32 to vector<8x1xf32>
    %22 = arith.divf %21, %10 : vector<8x1xf32>
    %23 = vector.broadcast %22 : vector<8x1xf32> to vector<8x128xf32>
    %24 = arith.mulf %20, %23 : vector<8x128xf32>
    %c0_13 = arith.constant 0 : index
    %c0_14 = arith.constant 0 : index
    %25 = vector.load %arg5[%c0_13, %c0_14] : memref<8x128xf32, #tpu.memory_space<vmem>>, vector<8x128xf32>
    tpu.vector_store %arg5[%c0_13, %c0_14], %24 {strides = array<i32>} : memref<8x128xf32, #tpu.memory_space<vmem>>, vector<8x128xf32>,
    return
  }
  func.func @transform_0(%arg0: i32) -> (i32, i32) {
    %c0_i32 = arith.constant 0 : i32
    %c0_i32_0 = arith.constant 0 : i32
    return %arg0, %c0_i32 : i32, i32
  }
  func.func @transform_1(%arg0: i32) -> (i32, i32) {
    %c0_i32 = arith.constant 0 : i32
    %c0_i32_0 = arith.constant 0 : i32
    %c0_i32_1 = arith.constant 0 : i32
    return %c0_i32, %c0_i32_0 : i32, i32
  }
  func.func @transform_2(%arg0: i32) -> (i32, i32) {
    %c0_i32 = arith.constant 0 : i32
    %c0_i32_0 = arith.constant 0 : i32
    %c0_i32_1 = arith.constant 0 : i32
    return %c0_i32, %c0_i32_0 : i32, i32
  }
  func.func @transform_3(%arg0: i32) -> (i32, i32) {
    %c0_i32 = arith.constant 0 : i32
    %c0_i32_0 = arith.constant 0 : i32
    %c0_i32_1 = arith.constant 0 : i32
    return %c0_i32, %c0_i32_0 : i32, i32
  }
  func.func @transform_4(%arg0: i32) -> (i32, i32) {
    %c0_i32 = arith.constant 0 : i32
    %c0_i32_0 = arith.constant 0 : i32
    return %arg0, %c0_i32 : i32, i32
  }
}

</mosaic_0001>

<bundles_post_ra>
// kernel: tpu_custom_call.1
= control target key start
LH: loop header
LB: loop body
LE: loop exit
PB: predicated region body
PF: predicated region fallthrough
CT: control target
= control target key end

     0   :  { %9 = vsyncpa [#allocation3], 0  ;;  %s1540_s0 = inlined_call_operand.hbm [shape: f32[8,32], index: 0, kind: input, shape index: {}]   ;;  %s1541_s1 = inlined_call_operand.hbm [shape: bf16[32,1024], index: 1, kind: input, shape index: {}]   ;;  %s1542_s2 = inlined_call_operand.hbm [shape: f32[1,1024], index: 2, kind: input, shape index: {}]   ;;  %s1543_s3 = inlined_call_operand.hbm [shape: bf16[1024,128], index: 3, kind: input, shape index: {}]   ;;  %s1544_s4 = inlined_call_operand.hbm [shape: f32[8,128], index: 4, kind: output, shape index: {}]  }
   0x1   :  { %10 = vsyncpa [#allocation6], 0 }
   0x2   :  { %11 = vsyncpa [#allocation9], 0 }
   0x3   :  { %12 = vsyncpa [#allocation4], 0  ;;  %s1453_s15 = smov [#allocation5]  }
   0x4   :  { %s28_s16 = sshll.u32 %s1453_s15, 4  ;;  %s29_s16 = int_to_ptr.vmem [resolvable:$true] %s28_s16 }
   0x5   :  { %s1353_s17 = scalar_lea.vmem %s29_s16, 2048  ;;  %p1358_p1 = scmp.lt.s32.totalorder %s29_s16, %s29_s16 }
   0x6   :  { %p1354_p0 = scmp.ne.s32.totalorder %s29_s16, %s1353_s17  ;;  %p1359_p2 = scmp.lt.s32.totalorder %s1353_s17, %s1353_s17 }
   0x8   :  { %p1360_p3 = por %p1359_p2, %p1358_p1 }
   0xa   :  { %p1361_p4 = pnand %p1360_p3, %p1354_p0 }
   0xc   :  { %1364 = shalt.err (!%p1361_p4)
}
   0xd   :  { %s1454_s18 = smov 512   ;;  %s1455_s19 = smov 32  }
   0xe   :  { %34 = dma.hbm_to_vmem [thread:$0]  %s1541_s1, 2048, %s29_s16, [#allocation6], %s1454_s18, %s1454_s18, %s1455_s19  }
   0xf   :  { %s1456_s22 = smov [#allocation2]   ;;  %s1457_s24 = smov [#allocation7]  }
  0x10   :  { %s19_s23 = sshll.u32 %s1456_s22, 4  ;;  %s41_s25 = sshll.u32 %s1457_s24, 4  ;;  %s20_s23 = int_to_ptr.vmem [resolvable:$true] %s19_s23  ;;  %s42_s25 = int_to_ptr.vmem [resolvable:$true] %s41_s25 }
  0x11   :  { %s1373_s26 = scalar_lea.vmem %s20_s23, 128  ;;  %p1378_p6 = scmp.lt.s32.totalorder %s20_s23, %s20_s23 }
  0x12   :  { %p1374_p5 = scmp.ne.s32.totalorder %s20_s23, %s1373_s26  ;;  %p1379_p7 = scmp.lt.s32.totalorder %s1373_s26, %s1373_s26 }
  0x14   :  { %p1380_p8 = por %p1379_p7, %p1378_p6 }
  0x16   :  { %p1381_p9 = pnand %p1380_p8, %p1374_p5 }
  0x18   :  { %1384 = shalt.err (!%p1381_p9)
}
  0x19   :  { %22 = dma.hbm_to_vmem [thread:$0]  %s1540_s0, 128, %s20_s23, [#allocation3]  }
  0x1a   :  { %s1393_s29 = scalar_lea.vmem %s42_s25, 128  ;;  %p1398_p11 = scmp.lt.s32.totalorder %s42_s25, %s42_s25 }
  0x1b   :  { %p1394_p10 = scmp.ne.s32.totalorder %s42_s25, %s1393_s29  ;;  %p1399_p12 = scmp.lt.s32.totalorder %s1393_s29, %s1393_s29 }
  0x1d   :  { %p1400_p13 = por %p1399_p12, %p1398_p11 }
  0x1f   :  { %p1401_p0 = pnand %p1400_p13, %p1394_p10 }
  0x21   :  { %1404 = shalt.err (!%p1401_p0)
}
  0x22   :  { %44 = dma.hbm_to_vmem [thread:$0]  %s1542_s2, 128, %s42_s25, [#allocation6]  }
  0x23   :  { %s1458_s5 = smov [#allocation8]  }
  0x24   :  { %s50_s6 = sshll.u32 %s1458_s5, 4  ;;  %s51_s6 = int_to_ptr.vmem [resolvable:$true] %s50_s6 }
  0x25   :  { %s1413_s7 = scalar_lea.vmem %s51_s6, 8192  ;;  %p1418_p2 = scmp.lt.s32.totalorder %s51_s6, %s51_s6 }
  0x26   :  { %p1414_p1 = scmp.ne.s32.totalorder %s51_s6, %s1413_s7  ;;  %p1419_p3 = scmp.lt.s32.totalorder %s1413_s7, %s1413_s7 }
  0x28   :  { %p1420_p4 = por %p1419_p3, %p1418_p2 }
  0x2a   :  { %p1421_p5 = pnand %p1420_p4, %p1414_p1 }
  0x2c   :  { %1424 = shalt.err (!%p1421_p5)
}
  0x2d   :  { %s1459_s0 = smov 64   ;;  %s1460_s8 = smov 4  }
  0x2e   :  { %56 = dma.hbm_to_vmem [thread:$0]  %s1543_s3, 8192, %s51_s6, [#allocation9], %s1459_s0, %s1459_s0, %s1460_s8  }
  0x2f   :  { %1445 = dma.done.wait [#allocation3], 128  }
  0x30   :  { %1446 = vsyncadd [#allocation3], 4294967168 }
  0x31   :  { %1447 = dma.done.wait [#allocation6], 2176  }
  0x32   :  { %1448 = vsyncadd [#allocation6], 4294965120 }
  0x33   :  { %1449 = dma.done.wait [#allocation9], 8192  }
  0x34   :  { %1450 = vsyncadd [#allocation9], 4294959104  ;;  %v1461_v0 = vmov 0   ;;  %v89_v1 = vld [vmem:[#allocation5 + $0x40] sm:$0xff]  ;;  %v90_v3 = vld [vmem:[#allocation5 + $0x48] sm:$0xff]  ;;  %vm74_vm0 = vcmask 261120  }
  0x35   :  { %254 = vmatprep.mubr.bf16.mxu0 %v1461_v0  ;;  %295 = vmatprep.mubr.bf16.mxu1 %v1461_v0  ;;  %v93_v2 = vld [vmem:[#allocation5 + $0x60] sm:$0xff]  ;;  %v94_v5 = vld [vmem:[#allocation5 + $0x68] sm:$0xff]  ;;  %v70_v14 = vld [vmem:[#allocation2] sm:$0xff]  ;;  %s1462_s2 = smov [#allocation10]  }
  0x36   :  { %v1104_v4 = vcombine.high %v89_v1, %v93_v2  ;;  %v1103_v6 = vcombine.low %v89_v1, %v93_v2  ;;  %v81_v7 = vld [vmem:[#allocation5] sm:$0xff]  ;;  %v1106_v9 = vcombine.high %v90_v3, %v94_v5  ;;  %v1105_v10 = vcombine.low %v90_v3, %v94_v5  ;;  %v82_v12 = vld [vmem:[#allocation5 + $0x8] sm:$0xff]  ;;  %v91_v16 = vld [vmem:[#allocation5 + $0x50] sm:$0xff]  ;;  %s1084_s3 = sshll.u32 %s1462_s2, 4  ;;  %s1085_s3 = int_to_ptr.vmem [resolvable:$true] %s1084_s3 }
  0x37   :  { %v85_v8 = vld [vmem:[#allocation5 + $0x20] sm:$0xff]  ;;  %v86_v13 = vld [vmem:[#allocation5 + $0x28] sm:$0xff]  ;;  %1341 = vtanh.f32 %v70_v14  ;;  %v95_v17 = vld [vmem:[#allocation5 + $0x70] sm:$0xff]  ;;  %s1425_s11 = scalar_lea.vmem %s1085_s3, 128  ;;  %p1430_p7 = scmp.lt.s32.totalorder %s1085_s3, %s1085_s3 }
  0x38   :  { %v1096_v11 = vcombine.high %v81_v7, %v85_v8  ;;  %234 = vmatprep.subr.bf16.mxu0 %v1104_v4  ;;  %v1098_v15 = vcombine.high %v82_v12, %v86_v13  ;;  %v92_v18 = vld [vmem:[#allocation5 + $0x58] sm:$0xff]  ;;  %275 = vmatprep.subr.bf16.mxu1 %v1106_v9  ;;  %v1095_v19 = vcombine.low %v81_v7, %v85_v8  ;;  %v83_v24 = vld [vmem:[#allocation5 + $0x10] sm:$0xff]  ;;  %v1277_v37 = vld [vmem:[#allocation8 + $0x78] sm:$0xff]   ;;  %v99_v9 = vlaneseq  ;;  %p1426_p6 = scmp.ne.s32.totalorder %s1085_s3, %s1425_s11  ;;  %p1431_p8 = scmp.lt.s32.totalorder %s1425_s11, %s1425_s11 }
  0x39   :  { %235 = vmatpush1.bf16.msra.mxu0 %v1103_v6  ;;  %v96_v20 = vld [vmem:[#allocation5 + $0x78] sm:$0xff]  ;;  %276 = vmatpush1.bf16.msra.mxu1 %v1105_v10  ;;  %v1097_v21 = vcombine.low %v82_v12, %v86_v13  ;;  %v1108_v22 = vcombine.high %v91_v16, %v95_v17  ;;  %v87_v25 = vld [vmem:[#allocation5 + $0x30] sm:$0xff]  ;;  %v1107_v30 = vcombine.low %v91_v16, %v95_v17  ;;  %v1278_v38 = vld [vmem:[#allocation8 + $0xf8] sm:$0xff]  }
  0x3a   :  { %236 = vmatprep.subr.bf16.mxu0 %v1096_v11  ;;  %277 = vmatprep.subr.bf16.mxu1 %v1098_v15  ;;  %v1110_v23 = vcombine.high %v92_v18, %v96_v20  ;;  %v84_v26 = vld [vmem:[#allocation5 + $0x18] sm:$0xff]  ;;  %v1109_v31 = vcombine.low %v92_v18, %v96_v20  ;;  %v1100_v33 = vcombine.high %v83_v24, %v87_v25  ;;  %v1279_v39 = vld [vmem:[#allocation8 + $0x38] sm:$0xff]   ;;  %v1285_v45 = vld [vmem:[#allocation8 + $0x68] sm:$0xff]   ;;  %v1511_v10 = vshrl.u32 %v99_v9, 7  ;;  %p1432_p9 = por %p1431_p8, %p1430_p7 }
  0x3b   :  { %v88_v28 = vld [vmem:[#allocation5 + $0x38] sm:$0xff]  ;;  %v1099_v35 = vcombine.low %v83_v24, %v87_v25  ;;  %v1280_v40 = vld [vmem:[#allocation8 + $0xb8] sm:$0xff]   ;;  %v1286_v46 = vld [vmem:[#allocation8 + $0xe8] sm:$0xff]  }
  0x3c   :  { %v1102_v34 = vcombine.high %v84_v26, %v88_v28  ;;  %v1101_v36 = vcombine.low %v84_v26, %v88_v28  ;;  %v1281_v41 = vld [vmem:[#allocation8 + $0x70] sm:$0xff]   ;;  %v1287_v47 = vld [vmem:[#allocation8 + $0x28] sm:$0xff]   ;;  %v1289_v49 = vld [vmem:[#allocation8 + $0x60] sm:$0xff]   ;;  %v101_v11 = vsub.s32 0, %v1511_v10  ;;  %v109_v12 = vsub.s32 2, %v1511_v10  ;;  %p1433_p10 = pnand %p1432_p9, %p1426_p6 }
  0x3d   :  { %237 = vmatpush1.bf16.msra.mxu0 %v1095_v19  ;;  %278 = vmatpush1.bf16.msra.mxu1 %v1097_v21  ;;  %v1282_v42 = vld [vmem:[#allocation8 + $0xf0] sm:$0xff]   ;;  %v1288_v48 = vld [vmem:[#allocation8 + $0xa8] sm:$0xff]   ;;  %v1290_v50 = vld [vmem:[#allocation8 + $0xe0] sm:$0xff]   ;;  %v105_v14 = vsub.s32 1, %v1511_v10  ;;  %v113_v15 = vsub.s32 3, %v1511_v10 }
  0x3e   :  { %316 = vmatprep.subr.bf16.mxu0 %v1108_v22  ;;  %357 = vmatprep.subr.bf16.mxu1 %v1110_v23  ;;  %v1283_v43 = vld [vmem:[#allocation8 + $0x30] sm:$0xff]   ;;  %v1291_v51 = vld [vmem:[#allocation8 + $0x20] sm:$0xff]   ;;  %v1293_v53 = vld [vmem:[#allocation8 + $0x58] sm:$0xff]  }
  0x3f   :  { %v1284_v44 = vld [vmem:[#allocation8 + $0xb0] sm:$0xff]   ;;  %v1292_v52 = vld [vmem:[#allocation8 + $0xa0] sm:$0xff]   ;;  %v1294_v54 = vld [vmem:[#allocation8 + $0xd8] sm:$0xff]  }
  0x40   :  { %v1295_v55 = vld [vmem:[#allocation8 + $0x18] sm:$0xff]   ;;  %v1297_v57 = vld [vmem:[#allocation8 + $0x50] sm:$0xff]   ;;  %v1301_v61 = vld [vmem:[#allocation8 + $0x48] sm:$0xff]  }
  0x41   :  { %v1296_v56 = vld [vmem:[#allocation8 + $0x98] sm:$0xff]   ;;  %v1298_v58 = vld [vmem:[#allocation8 + $0xd0] sm:$0xff]   ;;  %v1302_v62 = vld [vmem:[#allocation8 + $0xc8] sm:$0xff]  }
  0x42   :  { %v1299_v59 = vld [vmem:[#allocation8 + $0x10] sm:$0xff]   ;;  %v1303_v63 = vld [vmem:[#allocation8 + $0x8] sm:$0xff]   ;;  %v1305_v1 = vld [vmem:[#allocation8 + $0x40] sm:$0xff]  }
  0x43   :  { %v1300_v60 = vld [vmem:[#allocation8 + $0x90] sm:$0xff]   ;;  %v1306_v2 = vld [vmem:[#allocation8 + $0xc0] sm:$0xff]   ;;  %v1309_v5 = vld [vmem:[#allocation8 + $0x178] sm:$0xff]  }
  0x44   :  { %v1342_v27 = vpop.eup %1341  ;;  %v1307_v3 = vld [vmem:[#allocation8] sm:$0xff]   ;;  %v1310_v6 = vld [vmem:[#allocation8 + $0x1f8] sm:$0xff]  }
  0x45   :  { %v1500_v29 = vmul.f32 1.5707964, %v1342_v27  ;;  %v1308_v4 = vld [vmem:[#allocation8 + $0x80] sm:$0xff]   ;;  %v1515_v13 = vld [vmem:[#allocation7] sm:$0xff] }
  0x46   :  { %v102_v16 = vrot.slane %v1515_v13, %v101_v11  ;;  %v110_v17 = vrot.slane %v1515_v13, %v109_v12  ;;  %v106_v18 = vrot.slane %v1515_v13, %v105_v14  ;;  %v114_v19 = vrot.slane %v1515_v13, %v113_v15  ;;  %v1326_v9 = vld [vmem:[#allocation8 + $0x1d8] sm:$0xff]  }
  0x47   :  { %v80_v32 = vpack.c.bf16 %v1500_v29, %v1500_v29  ;;  %v73_v7 = vmul.f32 %v1500_v29, %v1500_v29  ;;  %v121_v29 = vsub.s32 5, %v1511_v10  ;;  %v125_v11 = vsub.s32 6, %v1511_v10  ;;  %v1327_v12 = vld [vmem:[#allocation8 + $0x118] sm:$0xff]  }
  0x48   :  { %v1328_v14 = vld [vmem:[#allocation8 + $0x198] sm:$0xff]   ;;  %v117_v15 = vsub.s32 4, %v1511_v10 }
  0x49   :  { %1111 = vmatmul.mubr.msk.bf16.vlgmr.msra.gmra.mxu0 %vm74_vm0, %v80_v32  ;;  %1112 = vmatmul.mubr.msk.bf16.vlgmr.msra.gmra.mxu1 %vm74_vm0, %v80_v32  ;;  %v75_v8 = vsel %vm74_vm0, %v73_v7, 0.0  ;;  %v1324_v7 = vld [vmem:[#allocation8 + $0x1a0] sm:$0xff]  }
  0x4a   :  { %317 = vmatpush1.bf16.msra.mxu0 %v1107_v30  ;;  %358 = vmatpush1.bf16.msra.mxu1 %v1109_v31 }
  0x4b   :  { %318 = vmatprep.subr.bf16.mxu0 %v1100_v33  ;;  %359 = vmatprep.subr.bf16.mxu1 %v1102_v34  ;;  %v129_v33 = vsub.s32 7, %v1511_v10  ;;  %v1335_v10 = vld [vmem:[#allocation8 + $0x108] sm:$0xff]  }
  0x4c   :  { %336 = vmatprep.mubr.bf16.mxu0 %v1461_v0  ;;  %377 = vmatprep.mubr.bf16.mxu1 %v1461_v0  ;;  %v1304_v0 = vld [vmem:[#allocation8 + $0x88] sm:$0xff]  }
  0x4d   :  { %76 = vadd.xlane.f32.xlu0 %v75_v8  ;;  %v1325_v8 = vld [vmem:[#allocation8 + $0x158] sm:$0xff]  }
  0x4e   :  { %319 = vmatpush1.bf16.msra.mxu0 %v1099_v35  ;;  %360 = vmatpush1.bf16.msra.mxu1 %v1101_v36 }
  0x4f   :  { %1179 = vmatprep.subr.bf16.mxu0 %v1277_v37  ;;  %1201 = vmatprep.subr.bf16.mxu1 %v1278_v38 }
  0x51   :  { %1113 = vmatmul.mubr.msk.bf16.vlgmr.msra.gmra.mxu0 %vm74_vm0, %v80_v32  ;;  %1114 = vmatmul.mubr.msk.bf16.vlgmr.msra.gmra.mxu1 %vm74_vm0, %v80_v32 }
  0x52   :  { %1180 = vmatpush3.bf16.msra.mxu0 %v1279_v39  ;;  %1202 = vmatpush3.bf16.msra.mxu1 %v1280_v40 }
  0x53   :  { %1181 = vmatprep.subr.bf16.mxu0 %v1281_v41  ;;  %1203 = vmatprep.subr.bf16.mxu1 %v1282_v42  ;;  %v1311_v41 = vld [vmem:[#allocation8 + $0x138] sm:$0xff]  }
  0x54   :  { %v1312_v42 = vld [vmem:[#allocation8 + $0x1b8] sm:$0xff]  }
  0x56   :  { %1182 = vmatpush3.bf16.msra.mxu0 %v1283_v43  ;;  %1204 = vmatpush3.bf16.msra.mxu1 %v1284_v44  ;;  %v122_v43 = vrot.slane %v1515_v13, %v121_v29 }
  0x57   :  { %1183 = vmatprep.subr.bf16.mxu0 %v1285_v45  ;;  %1205 = vmatprep.subr.bf16.mxu1 %v1286_v46  ;;  %v1313_v45 = vld [vmem:[#allocation8 + $0x170] sm:$0xff]  }
  0x58   :  { %v1314_v46 = vld [vmem:[#allocation8 + $0x1f0] sm:$0xff]  }
  0x5a   :  { %1184 = vmatpush3.bf16.msra.mxu0 %v1287_v47  ;;  %1206 = vmatpush3.bf16.msra.mxu1 %v1288_v48 }
  0x5b   :  { %1185 = vmatprep.subr.bf16.mxu0 %v1289_v49  ;;  %1207 = vmatprep.subr.bf16.mxu1 %v1290_v50  ;;  %v130_v49 = vrot.slane %v1515_v13, %v129_v33 }
  0x5e   :  { %1186 = vmatpush3.bf16.msra.mxu0 %v1291_v51  ;;  %1208 = vmatpush3.bf16.msra.mxu1 %v1292_v52  ;;  %v1315_v52 = vld [vmem:[#allocation8 + $0x130] sm:$0xff]  }
  0x5f   :  { %1187 = vmatprep.subr.bf16.mxu0 %v1293_v53  ;;  %1209 = vmatprep.subr.bf16.mxu1 %v1294_v54  ;;  %v1316_v53 = vld [vmem:[#allocation8 + $0x1b0] sm:$0xff]  }
  0x62   :  { %1188 = vmatpush3.bf16.msra.mxu0 %v1295_v55  ;;  %1210 = vmatpush3.bf16.msra.mxu1 %v1296_v56  ;;  %v1317_v55 = vld [vmem:[#allocation8 + $0x168] sm:$0xff]  }
  0x63   :  { %1189 = vmatprep.subr.bf16.mxu0 %v1297_v57  ;;  %1211 = vmatprep.subr.bf16.mxu1 %v1298_v58  ;;  %v1318_v56 = vld [vmem:[#allocation8 + $0x1e8] sm:$0xff]  }
  0x66   :  { %1190 = vmatpush3.bf16.msra.mxu0 %v1299_v59  ;;  %1212 = vmatpush3.bf16.msra.mxu1 %v1300_v60 }
  0x67   :  { %1191 = vmatprep.subr.bf16.mxu0 %v1301_v61  ;;  %1213 = vmatprep.subr.bf16.mxu1 %v1302_v62 }
  0x6a   :  { %1192 = vmatpush3.bf16.msra.mxu0 %v1303_v63  ;;  %1214 = vmatpush3.bf16.msra.mxu1 %v1304_v0  ;;  %v1319_v0 = vld [vmem:[#allocation8 + $0x128] sm:$0xff]  }
  0x6b   :  { %1193 = vmatprep.subr.bf16.mxu0 %v1305_v1  ;;  %1215 = vmatprep.subr.bf16.mxu1 %v1306_v2  ;;  %v1320_v1 = vld [vmem:[#allocation8 + $0x1a8] sm:$0xff]  }
  0x6e   :  { %1194 = vmatpush3.bf16.msra.mxu0 %v1307_v3  ;;  %1216 = vmatpush3.bf16.msra.mxu1 %v1308_v4  ;;  %v1321_v3 = vld [vmem:[#allocation8 + $0x160] sm:$0xff]  }
  0x6f   :  { %1223 = vmatprep.subr.bf16.mxu0 %v1309_v5  ;;  %1245 = vmatprep.subr.bf16.mxu1 %v1310_v6  ;;  %v1322_v4 = vld [vmem:[#allocation8 + $0x1e0] sm:$0xff]  }
  0x70   :  { %v1323_v6 = vld [vmem:[#allocation8 + $0x120] sm:$0xff]  }
 0x109   :  { %v256_v20 = vpop.f32.mrf.mxu0  ;;  %v297_v21 = vpop.f32.mrf.mxu1 }
 0x10a   :  { %v257_v22 = vadd.f32 %v256_v20, %v102_v16  ;;  %v298_v23 = vadd.f32 %v297_v21, %v110_v17  ;;  %v1329_v16 = vld [vmem:[#allocation8 + $0x150] sm:$0xff]   ;;  %v118_v21 = vrot.slane %v1515_v13, %v117_v15 }
 0x10b   :  { %v258_v24 = vpop.f32.mrf.mxu0  ;;  %v299_v25 = vpop.f32.mrf.mxu1  ;;  %v1330_v17 = vld [vmem:[#allocation8 + $0x1d0] sm:$0xff]  }
 0x10c   :  { %v388_v26 = vmul.f32 %v298_v23, %v298_v23  ;;  %v259_v27 = vadd.f32 %v258_v24, %v106_v18  ;;  %v300_v28 = vadd.f32 %v299_v25, %v114_v19  ;;  %v386_v30 = vmul.f32 %v257_v22, %v257_v22  ;;  %v1331_v19 = vld [vmem:[#allocation8 + $0x110] sm:$0xff]   ;;  %v1333_v22 = vld [vmem:[#allocation8 + $0x148] sm:$0xff]  }
 0x10d   :  { %v260_v31 = vpop.f32.mrf.mxu0  ;;  %v301_v32 = vpop.f32.mrf.mxu1  ;;  %v126_v18 = vrot.slane %v1515_v13, %v125_v11  ;;  %v1332_v20 = vld [vmem:[#allocation8 + $0x190] sm:$0xff]   ;;  %v1334_v23 = vld [vmem:[#allocation8 + $0x1c8] sm:$0xff]   ;;  %v1339_v13 = vld [vmem:[#allocation8 + $0x100] sm:$0xff]  }
 0x10e   :  { %v387_v34 = vmul.f32 %v259_v27, %v259_v27  ;;  %v389_v35 = vmul.f32 %v300_v28, %v300_v28  ;;  %v396_v36 = vpack.c.bf16 %v388_v26, %v388_v26  ;;  %v394_v44 = vpack.c.bf16 %v386_v30, %v386_v30  ;;  %v1336_v25 = vld [vmem:[#allocation8 + $0x188] sm:$0xff]   ;;  %v1337_v27 = vld [vmem:[#allocation8 + $0x140] sm:$0xff]  }
 0x10f   :  { %v261_v37 = vpop.f32.mrf.mxu0  ;;  %v302_v38 = vpop.f32.mrf.mxu1  ;;  %v1338_v28 = vld [vmem:[#allocation8 + $0x1c0] sm:$0xff]  }
 0x110   :  { %v395_v39 = vpack.c.bf16 %v387_v34, %v387_v34  ;;  %v397_v40 = vpack.c.bf16 %v389_v35, %v389_v35  ;;  %v1340_v30 = vld [vmem:[#allocation8 + $0x180] sm:$0xff]  }
 0x111   :  { %v1526_v47 = vpop.f32.mrf.mxu0  ;;  %v1528_v48 = vpop.f32.mrf.mxu1 }
 0x112   :  { %946 = vmatprep.mubr.bf16.mxu0 %v395_v39  ;;  %986 = vmatprep.mubr.bf16.mxu1 %v397_v40  ;;  %v380_v24 = vadd.f32 %v1528_v48, %v126_v18  ;;  %v339_v26 = vadd.f32 %v1526_v47, %v118_v21 }
 0x113   :  { %947 = vmatmul.mubr.bf16.vlgmr.msra.gmra.mxu0 %v394_v44  ;;  %987 = vmatmul.mubr.bf16.vlgmr.msra.gmra.mxu1 %v396_v36  ;;  %v340_v50 = vpop.f32.mrf.mxu0  ;;  %v381_v51 = vpop.f32.mrf.mxu1 }
 0x114   :  { %1224 = vmatpush3.bf16.msra.mxu0 %v1311_v41  ;;  %1246 = vmatpush3.bf16.msra.mxu1 %v1312_v42  ;;  %v341_v54 = vadd.f32 %v340_v50, %v122_v43  ;;  %v382_v58 = vadd.f32 %v381_v51, %v130_v49  ;;  %v392_v29 = vmul.f32 %v380_v24, %v380_v24  ;;  %v77_v42 = vpop.xlane.xlu0 %76 }
 0x115   :  { %1225 = vmatprep.subr.bf16.mxu0 %v1313_v45  ;;  %1247 = vmatprep.subr.bf16.mxu1 %v1314_v46  ;;  %v342_v57 = vpop.f32.mrf.mxu0  ;;  %v383_v59 = vpop.f32.mrf.mxu1  ;;  %v390_v31 = vmul.f32 %v339_v26, %v339_v26  ;;  %v78_v43 = vadd.f32 248.0, %v77_v42 }
 0x116   :  { %v391_v60 = vmul.f32 %v341_v54, %v341_v54  ;;  %v393_v61 = vmul.f32 %v382_v58, %v382_v58  ;;  %v400_v32 = vpack.c.bf16 %v392_v29, %v392_v29 }
 0x117   :  { %v343_v62 = vpop.f32.mrf.mxu0  ;;  %v384_v63 = vpop.f32.mrf.mxu1  ;;  %v398_v33 = vpack.c.bf16 %v390_v31, %v390_v31  ;;  %v79_v44 = vmax.f32 %v78_v43, 1e-30 }
 0x118   :  { %1226 = vmatpush3.bf16.msra.mxu0 %v1315_v52  ;;  %1248 = vmatpush3.bf16.msra.mxu1 %v1316_v53  ;;  %v399_v2 = vpack.c.bf16 %v391_v60, %v391_v60  ;;  %v401_v5 = vpack.c.bf16 %v393_v61, %v393_v61 }
 0x119   :  { %1227 = vmatprep.subr.bf16.mxu0 %v1317_v55  ;;  %1249 = vmatprep.subr.bf16.mxu1 %v1318_v56  ;;  %1343 = vrcp.f32 %v79_v44 }
 0x11a   :  { %1026 = vmatprep.mubr.bf16.mxu0 %v399_v2  ;;  %1066 = vmatprep.mubr.bf16.mxu1 %v401_v5 }
 0x11c   :  { %1228 = vmatpush3.bf16.msra.mxu0 %v1319_v0  ;;  %1250 = vmatpush3.bf16.msra.mxu1 %v1320_v1 }
 0x11d   :  { %1229 = vmatprep.subr.bf16.mxu0 %v1321_v3  ;;  %1251 = vmatprep.subr.bf16.mxu1 %v1322_v4 }
 0x120   :  { %1230 = vmatpush3.bf16.msra.mxu0 %v1323_v6  ;;  %1252 = vmatpush3.bf16.msra.mxu1 %v1324_v7 }
 0x121   :  { %1231 = vmatprep.subr.bf16.mxu0 %v1325_v8  ;;  %1253 = vmatprep.subr.bf16.mxu1 %v1326_v9 }
 0x124   :  { %1232 = vmatpush3.bf16.msra.mxu0 %v1327_v12  ;;  %1254 = vmatpush3.bf16.msra.mxu1 %v1328_v14 }
 0x125   :  { %1233 = vmatprep.subr.bf16.mxu0 %v1329_v16  ;;  %1255 = vmatprep.subr.bf16.mxu1 %v1330_v17 }
 0x126   :  { %v1344_v57 = vpop.eup %1343 }
 0x128   :  { %1234 = vmatpush3.bf16.msra.mxu0 %v1331_v19  ;;  %1256 = vmatpush3.bf16.msra.mxu1 %v1332_v20 }
 0x129   :  { %1235 = vmatprep.subr.bf16.mxu0 %v1333_v22  ;;  %1257 = vmatprep.subr.bf16.mxu1 %v1334_v23 }
 0x12c   :  { %1236 = vmatpush3.bf16.msra.mxu0 %v1335_v10  ;;  %1258 = vmatpush3.bf16.msra.mxu1 %v1336_v25 }
 0x12d   :  { %1237 = vmatprep.subr.bf16.mxu0 %v1337_v27  ;;  %1259 = vmatprep.subr.bf16.mxu1 %v1338_v28 }
 0x130   :  { %1238 = vmatpush3.bf16.msra.mxu0 %v1339_v13  ;;  %1260 = vmatpush3.bf16.msra.mxu1 %v1340_v30 }
 0x133   :  { %1027 = vmatmul.mubr.bf16.vlgmr.msra.gmra.mxu0 %v398_v33  ;;  %1067 = vmatmul.mubr.bf16.vlgmr.msra.gmra.mxu1 %v400_v32 }
 0x1d3   :  { %v1195_v34 = vpop.f32.mrf.mxu0  ;;  %v1217_v35 = vpop.f32.mrf.mxu1 }
 0x1d5   :  { %v1196_v36 = vpop.f32.mrf.mxu0  ;;  %v1218_v37 = vpop.f32.mrf.mxu1 }
 0x1d6   :  { %v1197_v45 = vadd.f32 %v1196_v36, %v1195_v34  ;;  %v1219_v46 = vadd.f32 %v1218_v37, %v1217_v35 }
 0x1d7   :  { %v1198_v38 = vpop.f32.mrf.mxu0  ;;  %v1220_v39 = vpop.f32.mrf.mxu1 }
 0x1d8   :  { %v989_v51 = vadd.f32 %v1219_v46, %v1197_v45 }
 0x1d9   :  { %v1199_v40 = vpop.f32.mrf.mxu0  ;;  %v1221_v41 = vpop.f32.mrf.mxu1 }
 0x1f3   :  { %v1239_v47 = vpop.f32.mrf.mxu0  ;;  %v1261_v48 = vpop.f32.mrf.mxu1 }
 0x1f5   :  { %v1240_v49 = vpop.f32.mrf.mxu0  ;;  %v1262_v50 = vpop.f32.mrf.mxu1 }
 0x1f6   :  { %v1241_v52 = vadd.f32 %v1240_v49, %v1239_v47  ;;  %v1263_v56 = vadd.f32 %v1262_v50, %v1261_v48 }
 0x1f7   :  { %v1242_v53 = vpop.f32.mrf.mxu0  ;;  %v1264_v54 = vpop.f32.mrf.mxu1 }
 0x1f8   :  { %v1029_v55 = vadd.f32 %v1241_v52, %v989_v51 }
 0x1f9   :  { %v1243_v58 = vpop.f32.mrf.mxu0  ;;  %v1265_v59 = vpop.f32.mrf.mxu1 }
 0x1fa   :  { %v1069_v60 = vadd.f32 %v1263_v56, %v1029_v55 }
 0x1fc   :  { %v1076_v61 = vmul.f32 %v1344_v57, %v1069_v60 }
 0x1fe   :  { %1077 = vst [vmem:[#allocation10] sm:$0xff] %v1076_v61 }
 0x1ff   :  { %1436 = shalt.err (!%p1433_p10)
}
 0x200   :  { %1087 = dma.vmem_to_hbm [thread:$0]  %s1085_s3, 128, %s1544_s4, [#allocation4]  }
 0x201   :  { %1451 = dma.done.wait [#allocation4], 128  }
 0x202   :  { %1452 = vsyncadd [#allocation4], 4294967168 }
 0x203   :  { %1091 = vsyncpa [#allocation3], 1 }
 0x204   :  { %1092 = vsyncpa [#allocation6], 1 }
 0x205   :  { %1093 = vsyncpa [#allocation9], 1 }
 0x206   :  { %1094 = vsyncpa [#allocation4], 1 }

</bundles_post_ra>
